<compile_context>
chip_gen: v6e
topology: v6e:2x2x1
jax: 0.10.0
libtpu: 0.0.40
codegen_flags: <defaults>
</compile_context>

<pallas_src>
import jax
import jax.numpy as jnp
from jax.experimental import pallas as pl
from jax.experimental.pallas import tpu as pltpu


# ----------------------------- kernel body ---------------------------------

def _attention_fusion_kernel(x_ref, w_ref, o_ref):
    # x_ref: (M, TB, E) native dtype   w_ref: (1, E) f32   o_ref: (TB, E)
    M = x_ref.shape[0]
    w = w_ref[...]                                   # (1, E) float32

    # ---- pass 1: per-m scores as (TB, 1) f32 rows (TB stays on sublanes) --
    # f32 multiply with the f32 weight keeps alpha in tight agreement with the
    # reference f32-accumulated matmul even for bf16 inputs.
    scores = []
    for m in range(M):                               # M small & static -> unrolled
        x_m = x_ref[m]                               # (TB, E) native dtype
        s_m = jnp.sum(x_m.astype(jnp.float32) * w, axis=-1, keepdims=True)
        scores.append(s_m)                           # (TB, 1) f32

    # ---- softmax over the M "list" axis (elementwise over score rows) -----
    s_max = scores[0]
    for m in range(1, M):
        s_max = jnp.maximum(s_max, scores[m])
    exps = [jnp.exp(s - s_max) for s in scores]      # each (TB, 1) f32
    denom = exps[0]
    for m in range(1, M):
        denom = denom + exps[m]
    # Exact reciprocal: the kernel is HBM-bound, so the EUP cost is hidden.
    inv = pl.reciprocal(denom, approx=False)         # (TB, 1) f32

    # ---- pass 2: weighted sum, accumulated per-m (no (M,TB,E) temps) ------
    # alpha_m is cast to the native dtype ONCE as a (TB,1) column; the big
    # (TB,E) multiply then runs in the native dtype (bf16 VALU on v6e/v7x),
    # and only the running accumulator is f32.
    alpha0 = (exps[0] * inv).astype(x_ref.dtype)
    acc = (x_ref[0] * alpha0).astype(jnp.float32)    # (TB, E) f32
    for m in range(1, M):
        alpha_m = (exps[m] * inv).astype(x_ref.dtype)
        acc = acc + (x_ref[m] * alpha_m).astype(jnp.float32)

    o_ref[...] = acc.astype(o_ref.dtype)


# --------------------------- tiling heuristics ------------------------------

def _tpu_generation_info():
    """(physical VMEM bytes per core, # TensorCores) with safe fallbacks."""
    vmem_bytes = 64 << 20            # conservative default (v7x per-TC VMEM)
    num_cores = 1
    try:
        info = pltpu.get_tpu_info()
        vmem_bytes = int(getattr(info, "vmem_capacity_bytes", vmem_bytes))
    except Exception:
        pass
    try:
        kind = (getattr(jax.devices()[0], "device_kind", "") or "").lower()
        if "v7" in kind:
            num_cores = 2            # v7x: 2 TensorCores per chip
    except Exception:
        pass
    return vmem_bytes, num_cores


def _vmem_budget(vmem_bytes):
    """(tile budget, scoped vmem limit) per generation."""
    if vmem_bytes >= (100 << 20):    # v5e / v6e: 128 MiB physical, single TC
        return (88 << 20), (104 << 20)
    return (28 << 20), (44 << 20)    # v7x: 64 MiB per TensorCore


def _sublane_granularity(itemsize):
    # Sub-32-bit dtypes pack rows along sublanes: 8 (f32), 16 (bf16), 32 (i8).
    return 8 * max(1, 4 // itemsize)


def _tile_vmem_bytes(M, tb, E, itemsize):
    x_tile = M * tb * E * itemsize          # input block
    o_tile = tb * E * itemsize              # output block
    f32_tmp = 3 * tb * E * 4                # f32 accumulator + live upcast temps
    return 2 * (x_tile + o_tile) + f32_tmp  # double-buffered in/out + temps


def _pick_tb(M, B, E, itemsize, budget, num_cores):
    """Largest batch tile (dtype-aware granularity, divides B) within budget."""
    gran = _sublane_granularity(itemsize)
    cands = sorted((t for t in range(gran, B + 1, gran) if B % t == 0),
                   reverse=True)
    if not cands:
        return B                            # full-extent fallback (small/odd B)
    fits = [t for t in cands if _tile_vmem_bytes(M, t, E, itemsize) <= budget]
    if not fits:
        return cands[-1]                    # smallest legal tile (guarded below)
    if num_cores > 1:
        # v7x megacore: prefer an even number of grid steps so each TC gets an
        # equal share of an otherwise bandwidth-limited loop.
        balanced = [t for t in fits if (B // t) % num_cores == 0]
        if balanced:
            return balanced[0]              # largest balanced tile
    return fits[0]                          # single TC: biggest tile that fits


# ------------------------------- wrapper ------------------------------------

def attention_fusion(x_stack, weight, *, tb=None):
    """x_stack: (M, B, E) stacked inputs; weight: (E, 1). Returns (B, E)."""
    M, B, E = x_stack.shape
    assert weight.shape == (E, 1)

    vmem_bytes, num_cores = _tpu_generation_info()
    budget, limit = _vmem_budget(vmem_bytes)

    # Pad E to a multiple of 128 so output stores are lane-dense (unmasked vst)
    # and the pass-1 lane reduce is full-width.  Zero-padding is exact: padded
    # lanes contribute 0 to the scores and produce 0 in the output columns.
    E_pad = ((E + 127) // 128) * 128
    w_row = weight.reshape(1, E).astype(jnp.float32)   # E on the lane axis
    if E_pad != E:
        x_stack = jnp.pad(x_stack, ((0, 0), (0, 0), (0, E_pad - E)))
        w_row = jnp.pad(w_row, ((0, 0), (0, E_pad - E)))

    itemsize = x_stack.dtype.itemsize
    if tb is None:
        tb = _pick_tb(M, B, E_pad, itemsize, budget, num_cores)
    gran = _sublane_granularity(itemsize)
    assert B % tb == 0, "batch tile must divide B"
    assert tb % gran == 0 or tb == B, "batch tile must match sublane packing"

    # Guard: if a fallback tile would exceed the generation limit (huge M*E),
    # raise the scoped limit to cover it, capped under physical VMEM.
    # TODO(synk): add an E-tiling path for shapes where even tb=gran overflows VMEM.
    need = _tile_vmem_bytes(M, tb, E_pad, itemsize) + (4 << 20)
    limit = int(min(max(limit, need), vmem_bytes - (4 << 20)))

    cost = pl.CostEstimate(
        flops=4 * M * B * E_pad,
        transcendentals=M * B,
        bytes_accessed=(M + 1) * B * E_pad * itemsize + E_pad * 4)

    out = pl.pallas_call(
        _attention_fusion_kernel,
        out_shape=jax.ShapeDtypeStruct((B, E_pad), x_stack.dtype),
        grid_spec=pltpu.PrefetchScalarGridSpec(
            num_scalar_prefetch=0,
            grid=(B // tb,),
            in_specs=[
                pl.BlockSpec((M, tb, E_pad), lambda i: (0, i, 0)),
                pl.BlockSpec((1, E_pad), lambda i: (0, 0)),
            ],
            out_specs=pl.BlockSpec((tb, E_pad), lambda i: (i, 0)),
        ),
        compiler_params=pltpu.CompilerParams(
            dimension_semantics=("parallel",),
            vmem_limit_bytes=limit),
        cost_estimate=cost,
    )(x_stack, w_row)

    if E_pad != E:
        out = out[:, :E]
    return out


def attention_fusion_ref(x_stack, weight):
    """Pure-JAX reference mirroring the PyTorch forward exactly."""
    M, B, E = x_stack.shape
    scores = jnp.concatenate(
        [x_stack[m] @ weight for m in range(M)], axis=-1)        # (B, M)
    alpha = jax.nn.softmax(scores, axis=-1)                      # (B, M)
    return sum(x_stack[m] * alpha[:, m][:, None] for m in range(M))


if __name__ == "__main__":
    # Small shapes: M=4 tensors in the list, batch B=8, emb_size E=128.
    M, B, E = 4, 8, 128
    key = jax.random.PRNGKey(0)
    k_x, k_w, k_x2, k_w2 = jax.random.split(key, 4)

    # Deterministic "randn"-style init (synthetic weights, no checkpoint load).
    x_stack = jax.random.normal(k_x, (M, B, E), dtype=jnp.float32)
    weight = jax.random.normal(k_w, (E, 1), dtype=jnp.float32)

    out = jax.block_until_ready(attention_fusion(x_stack, weight))
    ref = attention_fusion_ref(x_stack, weight)
    assert out.shape == (B, E)
    assert jnp.allclose(out, ref, atol=1e-5, rtol=1e-5), "mismatch vs reference"

    # Non-multiple-of-128 emb_size exercises the lane-padding path.
    E2 = 96
    x2 = jax.random.normal(k_x2, (M, B, E2), dtype=jnp.float32)
    w2 = jax.random.normal(k_w2, (E2, 1), dtype=jnp.float32)
    out2 = jax.block_until_ready(attention_fusion(x2, w2))
    ref2 = attention_fusion_ref(x2, w2)
    assert out2.shape == (B, E2)
    assert jnp.allclose(out2, ref2, atol=1e-5, rtol=1e-5), "mismatch (padded E)"

    print("KERNEL_OK")
</pallas_src>

<mosaic_0001>
module attributes {stable_mosaic.version = 11 : i64} {
  func.func @_attention_fusion_kernel(%arg0: i32, %arg1: memref<4x8x128xf32, #tpu.memory_space<vmem>>, %arg2: memref<1x128xf32, #tpu.memory_space<vmem>>, %arg3: memref<8x128xf32, #tpu.memory_space<vmem>>) attributes {dimension_semantics = [#tpu.dimension_semantics<parallel>], iteration_bounds = array<i64: 1>, scalar_prefetch = 0 : i64, scratch_operands = 0 : i64, tpu.core_type = #tpu.core_type<tc>, window_params = [{transform_indices = @transform_0, window_bounds = array<i64: 4, 8, 128>}, {pipeline_mode = #tpu.pipeline_mode<synchronous>, transform_indices = @transform_1, window_bounds = array<i64: 1, 128>}, {transform_indices = @transform_2, window_bounds = array<i64: 8, 128>}]} {
    %c0 = arith.constant 0 : index
    %c0_0 = arith.constant 0 : index
    %0 = vector.load %arg2[%c0, %c0_0] : memref<1x128xf32, #tpu.memory_space<vmem>>, vector<1x128xf32>
    %c0_1 = arith.constant 0 : index
    %c0_2 = arith.constant 0 : index
    %c0_3 = arith.constant 0 : index
    %1 = vector.load %arg1[%c0_1, %c0_2, %c0_3] : memref<4x8x128xf32, #tpu.memory_space<vmem>>, vector<1x8x128xf32>
    %2 = vector.shape_cast %1 : vector<1x8x128xf32> to vector<8x128xf32>
    %3 = vector.broadcast %0 : vector<1x128xf32> to vector<8x128xf32>
    %4 = arith.mulf %2, %3 : vector<8x128xf32>
    %cst = arith.constant dense<0.000000e+00> : vector<8xf32>
    %5 = vector.multi_reduction <add>, %4, %cst [1] : vector<8x128xf32> to vector<8xf32>
    %6 = vector.shape_cast %5 : vector<8xf32> to vector<8x1xf32>
    %c1 = arith.constant 1 : index
    %c0_4 = arith.constant 0 : index
    %c0_5 = arith.constant 0 : index
    %7 = vector.load %arg1[%c1, %c0_4, %c0_5] : memref<4x8x128xf32, #tpu.memory_space<vmem>>, vector<1x8x128xf32>
    %8 = vector.shape_cast %7 : vector<1x8x128xf32> to vector<8x128xf32>
    %9 = vector.broadcast %0 : vector<1x128xf32> to vector<8x128xf32>
    %10 = arith.mulf %8, %9 : vector<8x128xf32>
    %cst_6 = arith.constant dense<0.000000e+00> : vector<8xf32>
    %11 = vector.multi_reduction <add>, %10, %cst_6 [1] : vector<8x128xf32> to vector<8xf32>
    %12 = vector.shape_cast %11 : vector<8xf32> to vector<8x1xf32>
    %c2 = arith.constant 2 : index
    %c0_7 = arith.constant 0 : index
    %c0_8 = arith.constant 0 : index
    %13 = vector.load %arg1[%c2, %c0_7, %c0_8] : memref<4x8x128xf32, #tpu.memory_space<vmem>>, vector<1x8x128xf32>
    %14 = vector.shape_cast %13 : vector<1x8x128xf32> to vector<8x128xf32>
    %15 = vector.broadcast %0 : vector<1x128xf32> to vector<8x128xf32>
    %16 = arith.mulf %14, %15 : vector<8x128xf32>
    %cst_9 = arith.constant dense<0.000000e+00> : vector<8xf32>
    %17 = vector.multi_reduction <add>, %16, %cst_9 [1] : vector<8x128xf32> to vector<8xf32>
    %18 = vector.shape_cast %17 : vector<8xf32> to vector<8x1xf32>
    %c3 = arith.constant 3 : index
    %c0_10 = arith.constant 0 : index
    %c0_11 = arith.constant 0 : index
    %19 = vector.load %arg1[%c3, %c0_10, %c0_11] : memref<4x8x128xf32, #tpu.memory_space<vmem>>, vector<1x8x128xf32>
    %20 = vector.shape_cast %19 : vector<1x8x128xf32> to vector<8x128xf32>
    %21 = vector.broadcast %0 : vector<1x128xf32> to vector<8x128xf32>
    %22 = arith.mulf %20, %21 : vector<8x128xf32>
    %cst_12 = arith.constant dense<0.000000e+00> : vector<8xf32>
    %23 = vector.multi_reduction <add>, %22, %cst_12 [1] : vector<8x128xf32> to vector<8xf32>
    %24 = vector.shape_cast %23 : vector<8xf32> to vector<8x1xf32>
    %25 = arith.maximumf %6, %12 : vector<8x1xf32>
    %26 = arith.maximumf %25, %18 : vector<8x1xf32>
    %27 = arith.maximumf %26, %24 : vector<8x1xf32>
    %28 = arith.subf %6, %27 : vector<8x1xf32>
    %29 = math.exp %28 : vector<8x1xf32>
    %30 = arith.subf %12, %27 : vector<8x1xf32>
    %31 = math.exp %30 : vector<8x1xf32>
    %32 = arith.subf %18, %27 : vector<8x1xf32>
    %33 = math.exp %32 : vector<8x1xf32>
    %34 = arith.subf %24, %27 : vector<8x1xf32>
    %35 = math.exp %34 : vector<8x1xf32>
    %36 = arith.addf %29, %31 : vector<8x1xf32>
    %37 = arith.addf %36, %33 : vector<8x1xf32>
    %38 = arith.addf %37, %35 : vector<8x1xf32>
    %39 = tpu.reciprocal %38 : vector<8x1xf32> -> vector<8x1xf32>
    %40 = arith.mulf %29, %39 : vector<8x1xf32>
    %c0_13 = arith.constant 0 : index
    %c0_14 = arith.constant 0 : index
    %c0_15 = arith.constant 0 : index
    %41 = vector.load %arg1[%c0_13, %c0_14, %c0_15] : memref<4x8x128xf32, #tpu.memory_space<vmem>>, vector<1x8x128xf32>
    %42 = vector.shape_cast %41 : vector<1x8x128xf32> to vector<8x128xf32>
    %43 = vector.broadcast %40 : vector<8x1xf32> to vector<8x128xf32>
    %44 = arith.mulf %42, %43 : vector<8x128xf32>
    %45 = arith.mulf %31, %39 : vector<8x1xf32>
    %c1_16 = arith.constant 1 : index
    %c0_17 = arith.constant 0 : index
    %c0_18 = arith.constant 0 : index
    %46 = vector.load %arg1[%c1_16, %c0_17, %c0_18] : memref<4x8x128xf32, #tpu.memory_space<vmem>>, vector<1x8x128xf32>
    %47 = vector.shape_cast %46 : vector<1x8x128xf32> to vector<8x128xf32>
    %48 = vector.broadcast %45 : vector<8x1xf32> to vector<8x128xf32>
    %49 = arith.mulf %47, %48 : vector<8x128xf32>
    %50 = arith.addf %44, %49 : vector<8x128xf32>
    %51 = arith.mulf %33, %39 : vector<8x1xf32>
    %c2_19 = arith.constant 2 : index
    %c0_20 = arith.constant 0 : index
    %c0_21 = arith.constant 0 : index
    %52 = vector.load %arg1[%c2_19, %c0_20, %c0_21] : memref<4x8x128xf32, #tpu.memory_space<vmem>>, vector<1x8x128xf32>
    %53 = vector.shape_cast %52 : vector<1x8x128xf32> to vector<8x128xf32>
    %54 = vector.broadcast %51 : vector<8x1xf32> to vector<8x128xf32>
    %55 = arith.mulf %53, %54 : vector<8x128xf32>
    %56 = arith.addf %50, %55 : vector<8x128xf32>
    %57 = arith.mulf %35, %39 : vector<8x1xf32>
    %c3_22 = arith.constant 3 : index
    %c0_23 = arith.constant 0 : index
    %c0_24 = arith.constant 0 : index
    %58 = vector.load %arg1[%c3_22, %c0_23, %c0_24] : memref<4x8x128xf32, #tpu.memory_space<vmem>>, vector<1x8x128xf32>
    %59 = vector.shape_cast %58 : vector<1x8x128xf32> to vector<8x128xf32>
    %60 = vector.broadcast %57 : vector<8x1xf32> to vector<8x128xf32>
    %61 = arith.mulf %59, %60 : vector<8x128xf32>
    %62 = arith.addf %56, %61 : vector<8x128xf32>
    %c0_25 = arith.constant 0 : index
    %c0_26 = arith.constant 0 : index
    %63 = vector.load %arg3[%c0_25, %c0_26] : memref<8x128xf32, #tpu.memory_space<vmem>>, vector<8x128xf32>
    tpu.vector_store %arg3[%c0_25, %c0_26], %62 {strides = array<i32>} : memref<8x128xf32, #tpu.memory_space<vmem>>, vector<8x128xf32>,
    return
  }
  func.func @transform_0(%arg0: i32) -> (i32, i32, i32) {
    %c0_i32 = arith.constant 0 : i32
    %c0_i32_0 = arith.constant 0 : i32
    %c0_i32_1 = arith.constant 0 : i32
    return %c0_i32, %arg0, %c0_i32_0 : i32, i32, i32
  }
  func.func @transform_1(%arg0: i32) -> (i32, i32) {
    %c0_i32 = arith.constant 0 : i32
    %c0_i32_0 = arith.constant 0 : i32
    %c0_i32_1 = arith.constant 0 : i32
    return %c0_i32, %c0_i32_0 : i32, i32
  }
  func.func @transform_2(%arg0: i32) -> (i32, i32) {
    %c0_i32 = arith.constant 0 : i32
    %c0_i32_0 = arith.constant 0 : i32
    return %arg0, %c0_i32 : i32, i32
  }
}

</mosaic_0001>

<bundles_post_ra>
// kernel: tpu_custom_call.1
= control target key start
LH: loop header
LB: loop body
LE: loop exit
PB: predicated region body
PF: predicated region fallthrough
CT: control target
= control target key end

     0   :  { %7 = vsyncpa [#allocation3], 0  ;;  %s185_s0 = inlined_call_operand.hbm [shape: f32[4,8,128], index: 0, kind: input, shape index: {}]   ;;  %s186_s1 = inlined_call_operand.vmem [shape: f32[1,128], index: 1, kind: input, shape index: {}]   ;;  %s187_s2 = inlined_call_operand.hbm [shape: f32[8,128], index: 2, kind: output, shape index: {}]  }
   0x1   :  { %8 = vsyncpa [#allocation4], 0  ;;  %s157_s9 = smov [#allocation2]  }
   0x2   :  { %s14_s10 = sshll.u32 %s157_s9, 4  ;;  %s15_s10 = int_to_ptr.vmem [resolvable:$true] %s14_s10 }
   0x3   :  { %s121_s11 = scalar_lea.vmem %s15_s10, 512  ;;  %p126_p1 = scmp.lt.s32.totalorder %s15_s10, %s15_s10 }
   0x4   :  { %p122_p0 = scmp.ne.s32.totalorder %s15_s10, %s121_s11  ;;  %p127_p2 = scmp.lt.s32.totalorder %s121_s11, %s121_s11 }
   0x6   :  { %p128_p3 = por %p127_p2, %p126_p1 }
   0x8   :  { %p129_p4 = pnand %p128_p3, %p122_p0 }
   0xa   :  { %132 = shalt.err (!%p129_p4)
}
   0xb   :  { %s158_s12 = smov 128   ;;  %s159_s13 = smov 8  }
   0xc   :  { %20 = dma.hbm_to_vmem [thread:$0]  %s185_s0, 512, %s15_s10, [#allocation3], %s158_s12, %s158_s12, %s159_s13  }
   0xd   :  { %153 = dma.done.wait [#allocation3], 512  }
   0xe   :  { %154 = vsyncadd [#allocation3], 4294966784  ;;  %v98_v0 = vld [vmem:[%s186_s1] ss:$0 sm:$0xff]  ;;  %v43_v2 = vld [vmem:[#allocation2 + $0x10] sm:$0xff]  ;;  %s160_s0 = smov [#allocation5]  }
   0xf   :  { %v27_v1 = vld [vmem:[#allocation2] sm:$0xff]  ;;  %v44_v4 = vmul.f32 %v98_v0, %v43_v2  ;;  %v38_v5 = vld [vmem:[#allocation2 + $0x8] sm:$0xff]  ;;  %v48_v6 = vld [vmem:[#allocation2 + $0x18] sm:$0xff]  ;;  %s89_s1 = sshll.u32 %s160_s0, 4  ;;  %s90_s1 = int_to_ptr.vmem [resolvable:$true] %s89_s1 }
  0x10   :  { %v34_v3 = vmul.f32 %v98_v0, %v27_v1  ;;  %v39_v7 = vmul.f32 %v98_v0, %v38_v5  ;;  %v49_v8 = vmul.f32 %v98_v0, %v48_v6  ;;  %s133_s18 = scalar_lea.vmem %s90_s1, 128  ;;  %p138_p6 = scmp.lt.s32.totalorder %s90_s1, %s90_s1 }
  0x11   :  { %45 = vadd.xlane.f32.xlu1 %v44_v4  ;;  %p134_p5 = scmp.ne.s32.totalorder %s90_s1, %s133_s18  ;;  %p139_p7 = scmp.lt.s32.totalorder %s133_s18, %s133_s18 }
  0x12   :  { %35 = vadd.xlane.f32.xlu0 %v34_v3 }
  0x13   :  { %p140_p8 = por %p139_p7, %p138_p6 }
  0x15   :  { %50 = vadd.xlane.f32.xlu1 %v49_v8  ;;  %p141_p9 = pnand %p140_p8, %p134_p5 }
  0x16   :  { %40 = vadd.xlane.f32.xlu0 %v39_v7 }
  0x9a   :  { %v46_v10 = vpop.xlane.xlu1 %45 }
  0x9b   :  { %v36_v9 = vpop.xlane.xlu0 %35 }
  0x9e   :  { %v51_v13 = vpop.xlane.xlu1 %50 }
  0x9f   :  { %v41_v11 = vpop.xlane.xlu0 %40 }
  0xa0   :  { %v52_v12 = vmax.f32 %v36_v9, %v41_v11 }
  0xa2   :  { %v53_v14 = vmax.f32 %v52_v12, %v46_v10 }
  0xa4   :  { %v54_v15 = vmax.f32 %v53_v14, %v51_v13 }
  0xa6   :  { %v55_v16 = vsub.f32 %v36_v9, %v54_v15  ;;  %v58_v17 = vsub.f32 %v41_v11, %v54_v15  ;;  %v61_v18 = vsub.f32 %v46_v10, %v54_v15  ;;  %v64_v19 = vsub.f32 %v51_v13, %v54_v15 }
  0xa8   :  { %v56_v20 = vmul.f32 1.442695, %v55_v16  ;;  %v59_v21 = vmul.f32 1.442695, %v58_v17  ;;  %v62_v22 = vmul.f32 1.442695, %v61_v18 }
  0xa9   :  { %v65_v23 = vmul.f32 1.442695, %v64_v19 }
  0xaa   :  { %103 = vpow2.f32 %v56_v20 }
  0xab   :  { %105 = vpow2.f32 %v59_v21 }
  0xac   :  { %107 = vpow2.f32 %v62_v22 }
  0xad   :  { %109 = vpow2.f32 %v65_v23 }
  0xb7   :  { %v104_v24 = vpop.eup %103 }
  0xb8   :  { %v106_v25 = vpop.eup %105 }
  0xb9   :  { %v67_v26 = vadd.f32 %v106_v25, %v104_v24  ;;  %v108_v27 = vpop.eup %107 }
  0xba   :  { %v110_v29 = vpop.eup %109 }
  0xbb   :  { %v68_v28 = vadd.f32 %v108_v27, %v67_v26 }
  0xbd   :  { %v69_v30 = vadd.f32 %v110_v29, %v68_v28 }
  0xbf   :  { %111 = vrcp.f32 %v69_v30 }
  0xcc   :  { %v112_v31 = vpop.eup %111 }
  0xcd   :  { %v71_v32 = vmul.f32 %v112_v31, %v104_v24  ;;  %v73_v33 = vmul.f32 %v112_v31, %v106_v25  ;;  %v76_v34 = vmul.f32 %v112_v31, %v108_v27  ;;  %v79_v37 = vmul.f32 %v112_v31, %v110_v29 }
  0xcf   :  { %v72_v35 = vmul.f32 %v71_v32, %v27_v1  ;;  %v74_v36 = vmul.f32 %v73_v33, %v38_v5  ;;  %v77_v39 = vmul.f32 %v76_v34, %v43_v2  ;;  %v80_v41 = vmul.f32 %v79_v37, %v48_v6 }
  0xd1   :  { %v75_v38 = vadd.f32 %v74_v36, %v72_v35 }
  0xd3   :  { %v78_v40 = vadd.f32 %v77_v39, %v75_v38 }
  0xd5   :  { %v81_v42 = vadd.f32 %v80_v41, %v78_v40 }
  0xd7   :  { %82 = vst [vmem:[#allocation5] sm:$0xff] %v81_v42 }
  0xd8   :  { %144 = shalt.err (!%p141_p9)
}
  0xd9   :  { %92 = dma.vmem_to_hbm [thread:$0]  %s90_s1, 128, %s187_s2, [#allocation4]  }
  0xda   :  { %155 = dma.done.wait [#allocation4], 128  }
  0xdb   :  { %156 = vsyncadd [#allocation4], 4294967168 }
  0xdc   :  { %96 = vsyncpa [#allocation3], 1 }
  0xdd   :  { %97 = vsyncpa [#allocation4], 1 }

</bundles_post_ra>
